<compile_context>
chip_gen: v7x
topology: tpu7x:2x2x1
jax: 0.10.0
libtpu: 0.0.40
codegen_flags: <defaults>
</compile_context>

<pallas_src>
import math
import functools

import numpy as np
import jax
import jax.numpy as jnp
from jax.experimental import pallas as pl
from jax.experimental.pallas import tpu as pltpu


def _round_up(x, m):
    return (x + m - 1) // m * m


# --------------------------- fused linear projection kernel ---------------------------

def _linear_kernel(x_ref, w_ref, b_ref, o_ref, *, compute_dtype):
    x = x_ref[...].astype(compute_dtype)
    w = w_ref[...].astype(compute_dtype)
    o_ref[...] = jnp.dot(x, w, preferred_element_type=jnp.float32) + b_ref[...]


def linear_pallas(x, w, b, compute_dtype):
    """out = x @ w + b, row-tiled; w is (Din, Dout), b is (1, Dout). f32 output."""
    rows, din = x.shape
    dout = w.shape[1]
    TR = 128 if rows >= 128 else _round_up(max(rows, 1), 8)
    rows_p = _round_up(rows, TR)
    if rows_p != rows:
        x = jnp.pad(x, ((0, rows_p - rows), (0, 0)))
    out = pl.pallas_call(
        functools.partial(_linear_kernel, compute_dtype=compute_dtype),
        out_shape=jax.ShapeDtypeStruct((rows_p, dout), jnp.float32),
        grid=(rows_p // TR,),
        in_specs=[
            pl.BlockSpec((TR, din), lambda i: (i, 0)),
            pl.BlockSpec((din, dout), lambda i: (0, 0)),
            pl.BlockSpec((1, dout), lambda i: (0, 0)),
        ],
        out_specs=pl.BlockSpec((TR, dout), lambda i: (i, 0)),
        compiler_params=pltpu.CompilerParams(dimension_semantics=("parallel",)),
    )(x, w, b)
    return out[:rows]


# ------------------------------- main attention kernel --------------------------------

def _attn_kernel(q_ref, r_ref, k_ref, v_ref, e_ref, adj_ref,
                 hred_ref, hbc_ref, wg_o_ref, wg_r_ref, bg_ref,
                 gamma_ref, beta_ref,
                 out_ref,
                 z_acc, o_acc,
                 *, n_heads, head_dim, eps, ln_eps, leaky_slope):
    f32 = jnp.float32
    s_id = pl.program_id(1)
    n_s = pl.num_programs(1)
    TM, TS, D = e_ref.shape

    @pl.when(s_id == 0)
    def _():
        z_acc[...] = jnp.zeros_like(z_acc)
        o_acc[...] = jnp.zeros_like(o_acc)

    q = q_ref[...]                       # (TM, D) f32
    k = k_ref[...].astype(f32)           # (TS, D)
    v = v_ref[...].astype(f32)           # (TS, D)
    e = e_ref[...].astype(f32)           # (TM, TS, D)  streamed edge features
    adj = adj_ref[...]                   # (TM, TS)     0/1 edge mask

    # Per-edge gathers via broadcast (no selection matmuls).
    ke = e + k[None, :, :]               # (TM, TS, D)
    prod = ke * q[:, None, :]            # (TM, TS, D)

    # Per-head score: skinny (D, H) reduce matmul, exp on un-replicated heads.
    score = jnp.dot(prod.reshape(TM * TS, D), hred_ref[...],
                    preferred_element_type=f32).reshape(TM, TS, n_heads)
    score = jnp.where(adj[:, :, None] > 0.0, score, -1e30)   # mask BEFORE exp
    escore = jnp.exp(score)                                  # masked entries -> 0.0

    # Running per-dst softmax denominator (per head).
    z_acc[...] += jnp.sum(escore, axis=1)                    # (TM, H)

    # Broadcast per-head weights back to channels and accumulate weighted (v + e).
    esc_c = jnp.dot(escore.reshape(TM * TS, n_heads), hbc_ref[...],
                    preferred_element_type=f32).reshape(TM, TS, D)
    ve = e + v[None, :, :]
    o_acc[...] += jnp.sum(esc_c * ve, axis=1)                # (TM, D)

    @pl.when(s_id == n_s - 1)
    def _():
        scale = 1.0 / math.sqrt(head_dim)
        inv = scale * pl.reciprocal(eps + z_acc[...], approx=True)       # (TM, H)
        inv_c = jnp.dot(inv, hbc_ref[...], preferred_element_type=f32)   # (TM, D)
        o = o_acc[...] * inv_c                                           # h_update

        # Gated residual (pre-combined gate weights: never materialize h - r).
        r = r_ref[...]
        gate = jax.nn.sigmoid(
            jnp.dot(o, wg_o_ref[...], preferred_element_type=f32)
            + jnp.dot(r, wg_r_ref[...], preferred_element_type=f32)
            + bg_ref[...])
        pre = o - gate * o + gate * r

        # LayerNorm + LeakyReLU.
        mean = jnp.mean(pre, axis=-1, keepdims=True)
        var = jnp.mean((pre - mean) ** 2, axis=-1, keepdims=True)
        ln = (pre - mean) * jax.lax.rsqrt(var + ln_eps) * gamma_ref[...] + beta_ref[...]
        out_ref[...] = jnp.where(ln >= 0.0, ln, leaky_slope * ln)


# ------------------------------------ wrapper ------------------------------------------

def gtransformer_hetero_forward(params, x_src, x_dst, src_idx, dst_idx, y_edges,
                                n_heads, tile_m=128, compute_dtype=jnp.bfloat16):
    f32 = jnp.float32
    D = x_src.shape[1]
    H = n_heads
    d = D // H
    n_src, n_dst = x_src.shape[0], x_dst.shape[0]

    # ---- parameter layout: PyTorch (out, in) -> (in, out) for x @ W; fuse wide weights.
    def T(w):
        return jnp.asarray(w, f32).T

    wq, bq = params['q']; wk, bk = params['k']; wv, bv = params['v']
    we, be = params['e']; wr, br = params['r']; wg, bg = params['g']
    gamma, beta = params['ln']

    w_qr = jnp.concatenate([T(wq), T(wr)], axis=1)                       # (D, 2D)
    b_qr = jnp.concatenate([jnp.asarray(bq), jnp.asarray(br)]).reshape(1, 2 * D)
    w_kv = jnp.concatenate([T(wk), T(wv)], axis=1)                       # (D, 2D)
    b_kv = jnp.concatenate([jnp.asarray(bk), jnp.asarray(bv)]).reshape(1, 2 * D)

    wgT = jnp.asarray(wg, f32).T                                         # (3D, D)
    wg_o = wgT[:D] + wgT[2 * D:]          # multiplies h_update
    wg_r = wgT[D:2 * D] - wgT[2 * D:]     # multiplies residual

    # ---- tiling: large dst tiles, src-chunk axis for the online accumulator.
    TM = _round_up(min(tile_m, _round_up(n_dst, 8)), 8)
    n_dst_p = _round_up(n_dst, TM)
    if n_src <= 512:
        TS = _round_up(n_src, 8)
        n_src_p = TS
    else:
        TS = 512                          # multiple of 128 -> lane-legal mask blocks
        n_src_p = _round_up(n_src, TS)

    x_dst_p = jnp.pad(jnp.asarray(x_dst, f32), ((0, n_dst_p - n_dst), (0, 0)))
    x_src_p = jnp.pad(jnp.asarray(x_src, f32), ((0, n_src_p - n_src), (0, 0)))

    # ---- projections hoisted out of the attention kernel (grid-invariant / sparse).
    qr = linear_pallas(x_dst_p, w_qr, b_qr, compute_dtype)               # (n_dst_p, 2D)
    kv = linear_pallas(x_src_p, w_kv, b_kv, compute_dtype)               # (n_src_p, 2D)
    q_all, r_all = qr[:, :D], qr[:, D:]
    k_all, v_all = kv[:, :D], kv[:, D:]
    e_proj = linear_pallas(jnp.asarray(y_edges, f32), T(we),
                           jnp.asarray(be).reshape(1, D), compute_dtype)  # (E, D) sparse

    # ---- glue: densify the (projected) edge features and the 0/1 mask (NOT D-replicated).
    e_dense = jnp.zeros((n_dst_p, n_src_p, D), compute_dtype).at[
        dst_idx, src_idx].set(e_proj.astype(compute_dtype))
    adj = jnp.zeros((n_dst_p, n_src_p), f32).at[dst_idx, src_idx].set(1.0)

    # ---- static skinny head reduce / broadcast matrices.
    c = np.arange(D)
    hm_red = jnp.asarray((c[:, None] // d == np.arange(H)[None, :]).astype(np.float32))  # (D, H)
    hm_bc = hm_red.T                                                                      # (H, D)

    kernel = functools.partial(_attn_kernel, n_heads=H, head_dim=d,
                               eps=1e-8, ln_eps=1e-5, leaky_slope=0.01)

    grid = (n_dst_p // TM, n_src_p // TS)
    in_specs = [
        pl.BlockSpec((TM, D), lambda i, s: (i, 0)),        # q
        pl.BlockSpec((TM, D), lambda i, s: (i, 0)),        # r
        pl.BlockSpec((TS, D), lambda i, s: (s, 0)),        # k chunk
        pl.BlockSpec((TS, D), lambda i, s: (s, 0)),        # v chunk
        pl.BlockSpec((TM, TS, D), lambda i, s: (i, s, 0)),  # dense projected edge feats
        pl.BlockSpec((TM, TS), lambda i, s: (i, s)),        # edge mask
        pl.BlockSpec((D, H), lambda i, s: (0, 0)),          # head reduce
        pl.BlockSpec((H, D), lambda i, s: (0, 0)),          # head broadcast
        pl.BlockSpec((D, D), lambda i, s: (0, 0)),          # wg_o
        pl.BlockSpec((D, D), lambda i, s: (0, 0)),          # wg_r
        pl.BlockSpec((1, D), lambda i, s: (0, 0)),          # bg
        pl.BlockSpec((1, D), lambda i, s: (0, 0)),          # gamma
        pl.BlockSpec((1, D), lambda i, s: (0, 0)),          # beta
    ]

    out = pl.pallas_call(
        kernel,
        out_shape=jax.ShapeDtypeStruct((n_dst_p, D), f32),
        grid=grid,
        in_specs=in_specs,
        out_specs=pl.BlockSpec((TM, D), lambda i, s: (i, 0)),
        scratch_shapes=[pltpu.VMEM((TM, H), f32),   # running z  (per dst, per head)
                        pltpu.VMEM((TM, D), f32)],  # running unnormalized o
        compiler_params=pltpu.CompilerParams(
            dimension_semantics=("parallel", "arbitrary"),
            vmem_limit_bytes=48 * 1024 * 1024),     # fits v7x's 64 MiB with headroom
    )(q_all, r_all, k_all, v_all, e_dense, adj, hm_red, hm_bc,
      wg_o, wg_r, jnp.asarray(bg).reshape(1, D),
      jnp.asarray(gamma).reshape(1, D), jnp.asarray(beta).reshape(1, D))

    return out[:n_dst]


# ----------------------- pure-JAX reference (faithful to the torch module) ----------------------

def reference_forward(params, x_src, x_dst, src_idx, dst_idx, y_edges, n_heads, n_dst):
    D = x_src.shape[1]
    d = D // n_heads

    def lin(x, name):
        w, b = params[name]
        return x @ w.T + b

    q = lin(x_dst, 'q').reshape(-1, n_heads, d)
    k = lin(x_src, 'k').reshape(-1, n_heads, d)
    v = lin(x_src, 'v').reshape(-1, n_heads, d)
    e = lin(y_edges, 'e').reshape(-1, n_heads, d)
    ke = k[src_idx] + e
    score = jnp.sum(q[dst_idx] * ke, axis=-1, keepdims=True)      # (E, h, 1)
    escore = jnp.exp(score)
    z = jax.ops.segment_sum(escore, dst_idx, num_segments=n_dst)  # (N_dst, h, 1)
    norm = (1.0 / math.sqrt(d)) * escore / (1e-8 + z[dst_idx])
    ve = v[src_idx] + e
    o = jax.ops.segment_sum(norm * ve, dst_idx, num_segments=n_dst)
    h_upd = o.reshape(n_dst, n_heads * d)
    r = lin(x_dst, 'r')
    cat = jnp.concatenate([h_upd, r, h_upd - r], axis=1)
    wg, bg = params['g']
    b = jax.nn.sigmoid(cat @ wg.T + bg)
    pre = h_upd - b * h_upd + b * r
    mean = pre.mean(-1, keepdims=True)
    var = ((pre - mean) ** 2).mean(-1, keepdims=True)
    gamma, beta = params['ln']
    ln = (pre - mean) / jnp.sqrt(var + 1e-5) * gamma + beta
    return jnp.where(ln >= 0, ln, 0.01 * ln)


def torch_linear_init(key, out_dim, in_dim):
    k1, k2 = jax.random.split(key)
    bound = 1.0 / math.sqrt(in_dim)
    w = jax.random.uniform(k1, (out_dim, in_dim), jnp.float32, -bound, bound)
    b = jax.random.uniform(k2, (out_dim,), jnp.float32, -bound, bound)
    return w, b


if __name__ == "__main__":
    key = jax.random.PRNGKey(0)
    model_dim, n_heads = 32, 4
    n_src, n_dst = 16, 16
    keys = jax.random.split(key, 10)

    params = {
        'q': torch_linear_init(keys[0], model_dim, model_dim),
        'k': torch_linear_init(keys[1], model_dim, model_dim),
        'v': torch_linear_init(keys[2], model_dim, model_dim),
        'e': torch_linear_init(keys[3], model_dim, model_dim),
        'r': torch_linear_init(keys[4], model_dim, model_dim),
        'g': torch_linear_init(keys[5], model_dim, 3 * model_dim),
        'ln': (jnp.ones((model_dim,), jnp.float32), jnp.zeros((model_dim,), jnp.float32)),
    }

    x_src = 0.5 * jax.random.normal(keys[6], (n_src, model_dim), jnp.float32)
    x_dst = 0.5 * jax.random.normal(keys[7], (n_dst, model_dim), jnp.float32)

    # Deterministic random bipartite graph; every dst node has >= 1 in-edge, no duplicates.
    adj_np = np.array(jax.random.bernoulli(keys[8], 0.35, (n_dst, n_src)))
    adj_np[np.arange(n_dst), np.arange(n_dst) % n_src] = True
    dst_idx_np, src_idx_np = np.nonzero(adj_np)
    src_idx = jnp.asarray(src_idx_np, jnp.int32)
    dst_idx = jnp.asarray(dst_idx_np, jnp.int32)
    n_edges = int(src_idx_np.shape[0])
    y_edges = 0.5 * jax.random.normal(keys[9], (n_edges, model_dim), jnp.float32)

    ref = jax.block_until_ready(
        reference_forward(params, x_src, x_dst, src_idx, dst_idx, y_edges, n_heads, n_dst))

    # f32 MXU path (strict) and bf16 MXU path (looser tolerance).
    for dtype, tol in ((jnp.float32, 2e-2), (jnp.bfloat16, 8e-2)):
        out = gtransformer_hetero_forward(
            params, x_src, x_dst, src_idx, dst_idx, y_edges, n_heads,
            compute_dtype=dtype)
        out = jax.block_until_ready(out)
        assert out.shape == (n_dst, model_dim)
        max_diff = float(jnp.max(jnp.abs(out - ref)))
        assert max_diff < tol, f"mismatch vs reference ({dtype}), max abs diff = {max_diff}"

    print("KERNEL_OK")
</pallas_src>

<mosaic_0001>
module attributes {stable_mosaic.version = 11 : i64} {
  func.func @_linear_kernel(%arg0: i32, %arg1: memref<16x32xf32, #tpu.memory_space<vmem>>, %arg2: memref<32x64xf32, #tpu.memory_space<vmem>>, %arg3: memref<1x64xf32, #tpu.memory_space<vmem>>, %arg4: memref<16x64xf32, #tpu.memory_space<vmem>>) attributes {dimension_semantics = [#tpu.dimension_semantics<parallel>], iteration_bounds = array<i64: 1>, scalar_prefetch = 0 : i64, scratch_operands = 0 : i64, tpu.core_type = #tpu.core_type<tc>, window_params = [{transform_indices = @transform_0, window_bounds = array<i64: 16, 32>}, {pipeline_mode = #tpu.pipeline_mode<synchronous>, transform_indices = @transform_1, window_bounds = array<i64: 32, 64>}, {pipeline_mode = #tpu.pipeline_mode<synchronous>, transform_indices = @transform_2, window_bounds = array<i64: 1, 64>}, {transform_indices = @transform_3, window_bounds = array<i64: 16, 64>}]} {
    %c0 = arith.constant 0 : index
    %c0_0 = arith.constant 0 : index
    %0 = vector.load %arg1[%c0, %c0_0] : memref<16x32xf32, #tpu.memory_space<vmem>>, vector<16x32xf32>
    %c0_1 = arith.constant 0 : index
    %c0_2 = arith.constant 0 : index
    %1 = vector.load %arg2[%c0_1, %c0_2] : memref<32x64xf32, #tpu.memory_space<vmem>>, vector<32x64xf32>
    %cst = arith.constant dense<0.000000e+00> : vector<16x64xf32>
    %2 = tpu.matmul %0, %1, %cst {dimension_numbers = #tpu.dot_dimension_numbers<[1], [0], [0], [1], [0, 0, 1, 1], [], []>} : vector<16x32xf32>, vector<32x64xf32>, vector<16x64xf32> -> vector<16x64xf32>
    %c0_3 = arith.constant 0 : index
    %c0_4 = arith.constant 0 : index
    %3 = vector.load %arg3[%c0_3, %c0_4] : memref<1x64xf32, #tpu.memory_space<vmem>>, vector<1x64xf32>
    %4 = vector.broadcast %3 : vector<1x64xf32> to vector<16x64xf32>
    %5 = arith.addf %2, %4 : vector<16x64xf32>
    %c0_5 = arith.constant 0 : index
    %c0_6 = arith.constant 0 : index
    %6 = vector.load %arg4[%c0_5, %c0_6] : memref<16x64xf32, #tpu.memory_space<vmem>>, vector<16x64xf32>
    tpu.vector_store %arg4[%c0_5, %c0_6], %5 {strides = array<i32>} : memref<16x64xf32, #tpu.memory_space<vmem>>, vector<16x64xf32>,
    return
  }
  func.func @transform_0(%arg0: i32) -> (i32, i32) {
    %c0_i32 = arith.constant 0 : i32
    %c0_i32_0 = arith.constant 0 : i32
    return %arg0, %c0_i32 : i32, i32
  }
  func.func @transform_1(%arg0: i32) -> (i32, i32) {
    %c0_i32 = arith.constant 0 : i32
    %c0_i32_0 = arith.constant 0 : i32
    %c0_i32_1 = arith.constant 0 : i32
    return %c0_i32, %c0_i32_0 : i32, i32
  }
  func.func @transform_2(%arg0: i32) -> (i32, i32) {
    %c0_i32 = arith.constant 0 : i32
    %c0_i32_0 = arith.constant 0 : i32
    %c0_i32_1 = arith.constant 0 : i32
    return %c0_i32, %c0_i32_0 : i32, i32
  }
  func.func @transform_3(%arg0: i32) -> (i32, i32) {
    %c0_i32 = arith.constant 0 : i32
    %c0_i32_0 = arith.constant 0 : i32
    return %arg0, %c0_i32 : i32, i32
  }
}

</mosaic_0001>

<bundles_post_ra>
// kernel: tpu_custom_call.1
= control target key start
LH: loop header
LB: loop body
LE: loop exit
PB: predicated region body
PF: predicated region fallthrough
CT: control target
= control target key end

     0   :  { %8 = vsyncpa [#allocation3], 0  ;;  %s337_s0 = inlined_call_operand.hbm [shape: f32[16,32], index: 0, kind: input, shape index: {}]   ;;  %s338_s1 = inlined_call_operand.hbm [shape: f32[32,64], index: 1, kind: input, shape index: {}]   ;;  %s339_s2 = inlined_call_operand.vmem [shape: f32[1,64], index: 2, kind: input, shape index: {}]   ;;  %s340_s3 = inlined_call_operand.hbm [shape: f32[16,64], index: 3, kind: output, shape index: {}]  }
   0x1   :  { %9 = vsyncpa [#allocation6], 0 }
   0x2   :  { %10 = vsyncpa [#allocation4], 0  ;;  %s264_s12 = smov [#allocation2]   ;;  %s192_s16 = scalar_lea.hbm %s337_s0, 256 }
   0x3   :  { %s16_s13 = sshll.u32 %s264_s12, 4  ;;  %p193_p0 = scmp.ne.s32.totalorder %s337_s0, %s192_s16  ;;  %s17_s13 = int_to_ptr.vmem [resolvable:$true] %s16_s13 }
   0x4   :  { %p196_p1 = scmp.lt.u32.totalorder %s192_s16, %s337_s0 }
   0x6   :  { %p198_p2 = pnand %p196_p1, %p193_p0 }
   0x8   :  { %201 = shalt.err (!%p198_p2)
}
   0x9   :  { %s202_s21 = scalar_lea.vmem %s17_s13, 256  ;;  %p207_p4 = scmp.lt.s32.totalorder %s17_s13, %s17_s13 }
   0xa   :  { %p203_p3 = scmp.ne.s32.totalorder %s17_s13, %s202_s21  ;;  %p208_p5 = scmp.lt.s32.totalorder %s202_s21, %s202_s21 }
   0xc   :  { %p209_p6 = por %p208_p5, %p207_p4 }
   0xe   :  { %p210_p7 = pnand %p209_p6, %p203_p3 }
  0x10   :  { %213 = shalt.err (!%p210_p7)
}
  0x11   :  { %s265_s22 = smov 128   ;;  %s266_s23 = smov 8  }
  0x12   :  { %22 = dma.hbm_to_vmem [thread:$0]  %s337_s0, 256, %s17_s13, [#allocation3], %s265_s22, %s265_s22, %s266_s23  }
  0x13   :  { %s267_s26 = smov [#allocation5]   ;;  %s214_s30 = scalar_lea.hbm %s338_s1, 512 }
  0x14   :  { %s28_s27 = sshll.u32 %s267_s26, 4  ;;  %p215_p8 = scmp.ne.s32.totalorder %s338_s1, %s214_s30  ;;  %s29_s27 = int_to_ptr.vmem [resolvable:$true] %s28_s27 }
  0x15   :  { %p218_p9 = scmp.lt.u32.totalorder %s214_s30, %s338_s1 }
  0x17   :  { %p220_p10 = pnand %p218_p9, %p215_p8 }
  0x19   :  { %223 = shalt.err (!%p220_p10)
}
  0x1a   :  { %s224_s8 = scalar_lea.vmem %s29_s27, 512  ;;  %p229_p12 = scmp.lt.s32.totalorder %s29_s27, %s29_s27 }
  0x1b   :  { %p225_p11 = scmp.ne.s32.totalorder %s29_s27, %s224_s8  ;;  %p230_p13 = scmp.lt.s32.totalorder %s224_s8, %s224_s8 }
  0x1d   :  { %p231_p0 = por %p230_p13, %p229_p12 }
  0x1f   :  { %p232_p1 = pnand %p231_p0, %p225_p11 }
  0x21   :  { %235 = shalt.err (!%p232_p1)
}
  0x22   :  { %34 = dma.hbm_to_vmem [thread:$0]  %s338_s1, 512, %s29_s27, [#allocation6], %s265_s22, %s265_s22, %s266_s23  }
  0x23   :  { %258 = dma.done.wait [#allocation3], 256  }
  0x24   :  { %259 = vsyncadd [#allocation3], 4294967040 }
  0x25   :  { %260 = dma.done.wait [#allocation6], 512  }
  0x26   :  { %261 = vsyncadd [#allocation6], 4294966784  ;;  %vm56_vm0 = vcmask 261120   ;;  %v45_v0 = vld [vmem:[#allocation5] sm:$0xff]  ;;  %v46_v1 = vld [vmem:[#allocation5 + $0x8] sm:$0xff]  ;;  %s268_s11 = smov [#allocation7]  }
  0x27   :  { %v47_v2 = vld [vmem:[#allocation5 + $0x10] sm:$0xff]  ;;  %v179_v3 = vpack.c.bf16 %v46_v1, %v45_v0  ;;  %v48_v4 = vld [vmem:[#allocation5 + $0x18] sm:$0xff]  ;;  %s146_s12 = sshll.u32 %s268_s11, 4  ;;  %vm138_vm1 = vcmask 523264   ;;  %s147_s12 = int_to_ptr.vmem [resolvable:$true] %s146_s12 }
  0x28   :  { %v43_v5 = vld [vmem:[#allocation2] sm:$0xff]  ;;  %v183_v6 = vpack.c.bf16 %v48_v4, %v47_v2  ;;  %v44_v7 = vld [vmem:[#allocation2 + $0x8] sm:$0xff]  ;;  %s236_s13 = scalar_lea.vmem %s147_s12, 256  ;;  %p241_p3 = scmp.lt.s32.totalorder %s147_s12, %s147_s12 }
  0x29   :  { %176 = vmatprep.mubr.msk.f32.mxu0 %vm56_vm0, %v43_v5  ;;  %180 = vmatprep.subr.bf16.mxu0 %v179_v3  ;;  %v159_v8 = vld [vmem:[%s339_s2] ss:$0 sm:$0xff]  ;;  %p237_p2 = scmp.ne.s32.totalorder %s147_s12, %s236_s13  ;;  %p242_p4 = scmp.lt.s32.totalorder %s236_s13, %s236_s13 }
  0x2a   :  { %182 = vmatpush3.bf16.msra.mxu0 %v179_v3 }
  0x2b   :  { %184 = vmatprep.subr.bf16.mxu0 %v183_v6  ;;  %p243_p5 = por %p242_p4, %p241_p3 }
  0x2d   :  { %p244_p6 = pnand %p243_p5, %p237_p2 }
  0x2e   :  { %186 = vmatpush3.bf16.msra.mxu0 %v183_v6 }
  0x31   :  { %177 = vmatmul.mubr.msk.f32.vlgmr.msra.gmra.mrb[0].mxu0 %vm56_vm0, %v44_v7 }
 0x104   :  { %v178_v9 = vpop.f32.mrb[0].mxu0 }
 0x105   :  { %v135_v10 = vadd.f32 %v178_v9, %v159_v8  ;;  %v129_v11 = vpop.f32.mrb[1].mxu0 }
 0x106   :  { %v130_v12 = vadd.f32 %v159_v8, %v129_v11 }
 0x107   :  { %140 = vst.msk [vmem:[#allocation7 + $0x8] sm:$0xff] %vm138_vm1, %v135_v10 }
 0x108   :  { %139 = vst.msk [vmem:[#allocation7] sm:$0xff] %vm138_vm1, %v130_v12 }
 0x109   :  { %247 = shalt.err (!%p244_p6)
}
 0x10a   :  { %s248_s2 = scalar_lea.hbm %s340_s3, 256 }
 0x10b   :  { %p249_p7 = scmp.ne.s32.totalorder %s340_s3, %s248_s2  ;;  %p252_p8 = scmp.lt.u32.totalorder %s248_s2, %s340_s3 }
 0x10d   :  { %p254_p9 = pnand %p252_p8, %p249_p7 }
 0x10f   :  { %257 = shalt.err (!%p254_p9)
}
 0x110   :  { %152 = dma.vmem_to_hbm [thread:$0]  %s147_s12, 256, %s340_s3, [#allocation4], %s265_s22, %s265_s22, %s266_s23  }
 0x111   :  { %262 = dma.done.wait [#allocation4], 256  }
 0x112   :  { %263 = vsyncadd [#allocation4], 4294967040 }
 0x113   :  { %156 = vsyncpa [#allocation3], 1 }
 0x114   :  { %157 = vsyncpa [#allocation6], 1 }
 0x115   :  { %158 = vsyncpa [#allocation4], 1 }

</bundles_post_ra>
